<compile_context>
chip_gen: v5e
topology: v5e:2x2
jax: 0.10.0
libtpu: 0.0.40
codegen_flags: <defaults>
</compile_context>

<pallas_src>
import functools

import jax
import jax.numpy as jnp
from jax.experimental import pallas as pl
from jax.experimental.pallas import tpu as pltpu

EPS = 1e-3


def _bn_nobeta(x, gamma_b):
    """Training-mode batch norm, beta folded by caller, two-pass variance."""
    mean = jnp.mean(x, axis=0, keepdims=True)
    d = x - mean
    var = jnp.mean(d * d, axis=0, keepdims=True)
    return gamma_b * d * jax.lax.rsqrt(var + EPS)


# ---------------------------------------------------------------------------
# Single fused kernel: input projection + full time recurrence.
# ---------------------------------------------------------------------------
def _make_bnlstm_kernel(T, B, H):
    four_h = 4 * H

    def kernel(x_ref, wih_ref, whh_ref, h0_ref, c0_ref, bias_ref,
               gih_ref, ghh_ref, gc_ref, bc_ref, h_out_ref, c_out_ref):
        # Input projection for the whole sequence: one (T*B, In) @ (In, 4H)
        # MXU matmul; result stays VMEM/vreg-resident.
        wi_all = jnp.dot(x_ref[...], wih_ref[...],
                         preferred_element_type=jnp.float32)      # (T*B, 4H)
        whh = whh_ref[...]                                         # (H, 4H)

        # Hoist parameter broadcasts out of the time loop (no CSE otherwise).
        bias_b = jnp.broadcast_to(bias_ref[...], (B, four_h))
        gih_b = jnp.broadcast_to(gih_ref[...], (B, four_h))
        ghh_b = jnp.broadcast_to(ghh_ref[...], (B, four_h))
        gc_b = jnp.broadcast_to(gc_ref[...], (B, H))
        bc_b = jnp.broadcast_to(bc_ref[...], (B, H))

        h = h0_ref[...]
        c = c0_ref[...]

        # Fully unrolled recurrence: T is small and static; h/c stay in vregs.
        for t in range(T):
            wi = wi_all[t * B:(t + 1) * B, :]          # static, sublane-aligned
            wh = jnp.dot(h, whh, preferred_element_type=jnp.float32)

            # g-lane scale of 2 is pre-folded into gih/ghh/bias in the wrapper,
            # so s already carries 2*g in the last H lanes.
            s = _bn_nobeta(wh, ghh_b) + _bn_nobeta(wi, gih_b) + bias_b

            # One lane-dense EUP pass over the full (B, 4H) = (8, 128) vreg.
            u = jax.nn.sigmoid(s)
            f = u[:, 0 * H:1 * H]
            i = u[:, 1 * H:2 * H]
            o = u[:, 2 * H:3 * H]
            tg = 2.0 * u[:, 3 * H:4 * H] - 1.0          # tanh(g) = 2*sig(2g)-1

            c = f * c + i * tg
            bn_c = _bn_nobeta(c, gc_b) + bc_b
            h = o * jnp.tanh(bn_c)

        h_out_ref[...] = h
        c_out_ref[...] = c

    return kernel


@jax.jit
def bnlstm_sequence(x_seq, h0, c0, params):
    """Apply BNLSTMCell over a (T, B, In) sequence; returns final (h_T, c_T)."""
    T, B, In = x_seq.shape
    H = h0.shape[1]
    four_h = 4 * H

    # Fold: (a) LSTM bias + bn_ih.beta + bn_hh.beta into one vector, and
    # (b) the factor 2 on the g lanes (for the full-vreg sigmoid trick) into
    # the BN gammas and the folded bias.
    gate_scale = jnp.concatenate(
        [jnp.ones((1, 3 * H), jnp.float32), jnp.full((1, H), 2.0, jnp.float32)],
        axis=1)
    bias_total = (params["bias"] + params["bn_ih_b"] + params["bn_hh_b"]) * gate_scale
    gih = params["bn_ih_w"] * gate_scale
    ghh = params["bn_hh_w"] * gate_scale

    vmem = pl.BlockSpec(memory_space=pltpu.MemorySpace.VMEM)
    h_T, c_T = pl.pallas_call(
        _make_bnlstm_kernel(T, B, H),
        out_shape=(jax.ShapeDtypeStruct((B, H), jnp.float32),
                   jax.ShapeDtypeStruct((B, H), jnp.float32)),
        in_specs=[vmem] * 10,
        out_specs=(vmem, vmem),
    )(x_seq.reshape(T * B, In), params["weight_ih"], params["weight_hh"],
      h0, c0, bias_total, gih, ghh, params["bn_c_w"], params["bn_c_b"])
    return h_T, c_T


@functools.partial(jax.jit, static_argnames=("time",))
def bnlstm_cell(x, h0, c0, params, time=0):
    """BNLSTMCell.forward(input_, (h_0, c_0), time) -> (h_1, c_1)."""
    del time  # does not affect the functional output in training mode
    return bnlstm_sequence(x[None, ...], h0, c0, params)


def init_params(key, input_size, hidden_size):
    """Deterministic parameter init mirroring BNLSTMCell.reset_parameters."""
    four_h = 4 * hidden_size
    # weight_ih: orthogonal init of an (input_size, 4H) matrix.
    a = jax.random.normal(key, (four_h, input_size), dtype=jnp.float32)
    q, r = jnp.linalg.qr(a)                         # q: (4H, input_size)
    q = q * jnp.sign(jnp.diag(r))
    weight_ih = q.T.astype(jnp.float32)             # (input_size, 4H)
    # weight_hh: eye(H) repeated 4x along columns -> (H, 4H).
    weight_hh = jnp.tile(jnp.eye(hidden_size, dtype=jnp.float32), (1, 4))
    return {
        "weight_ih": weight_ih,
        "weight_hh": weight_hh,
        "bias": jnp.zeros((1, four_h), jnp.float32),
        "bn_ih_w": jnp.full((1, four_h), 0.1, jnp.float32),
        "bn_ih_b": jnp.zeros((1, four_h), jnp.float32),
        "bn_hh_w": jnp.full((1, four_h), 0.1, jnp.float32),
        "bn_hh_b": jnp.zeros((1, four_h), jnp.float32),
        "bn_c_w": jnp.full((1, hidden_size), 0.1, jnp.float32),
        "bn_c_b": jnp.zeros((1, hidden_size), jnp.float32),
    }


# ---------------------------------------------------------------------------
# Pure-JAX references (PyTorch training-mode forward, f32 throughout).
# ---------------------------------------------------------------------------
def bnlstm_cell_ref(x, h0, c0, p):
    hp = jax.lax.Precision.HIGHEST
    wi = jnp.dot(x, p["weight_ih"], precision=hp)
    wh = jnp.dot(h0, p["weight_hh"], precision=hp)

    def bn(v, g, b):
        mean = jnp.mean(v, axis=0, keepdims=True)
        var = jnp.mean((v - mean) ** 2, axis=0, keepdims=True)
        return g * (v - mean) * jax.lax.rsqrt(var + EPS) + b

    s = (bn(wh, p["bn_hh_w"], p["bn_hh_b"])
         + bn(wi, p["bn_ih_w"], p["bn_ih_b"])
         + p["bias"])
    H = h0.shape[1]
    f, i, o, g = (s[:, k * H:(k + 1) * H] for k in range(4))   # f, i, o, g
    c1 = jax.nn.sigmoid(f) * c0 + jax.nn.sigmoid(i) * jnp.tanh(g)
    h1 = jax.nn.sigmoid(o) * jnp.tanh(bn(c1, p["bn_c_w"], p["bn_c_b"]))
    return h1, c1


def bnlstm_sequence_ref(x_seq, h0, c0, p):
    h, c = h0, c0
    for t in range(x_seq.shape[0]):
        h, c = bnlstm_cell_ref(x_seq[t], h, c, p)
    return h, c


if __name__ == "__main__":
    batch, input_size, hidden_size, seq_len = 8, 16, 32, 8

    key = jax.random.PRNGKey(0)
    k_w, k_x, k_h, k_c = jax.random.split(key, 4)

    params = init_params(k_w, input_size, hidden_size)
    x_seq = jax.random.normal(k_x, (seq_len, batch, input_size),
                              dtype=jnp.float32)
    h0 = jax.random.normal(k_h, (batch, hidden_size), dtype=jnp.float32)
    c0 = jax.random.normal(k_c, (batch, hidden_size), dtype=jnp.float32)

    # Single step (module forward semantics).
    h1, c1 = bnlstm_cell(x_seq[0], h0, c0, params, time=0)
    jax.block_until_ready((h1, c1))
    h1_ref, c1_ref = bnlstm_cell_ref(x_seq[0], h0, c0, params)
    assert jnp.allclose(h1, h1_ref, atol=5e-4, rtol=5e-4), \
        float(jnp.abs(h1 - h1_ref).max())
    assert jnp.allclose(c1, c1_ref, atol=5e-4, rtol=5e-4), \
        float(jnp.abs(c1 - c1_ref).max())

    # Full-sequence recurrence (single pallas_call, fully fused / unrolled).
    hT, cT = bnlstm_sequence(x_seq, h0, c0, params)
    jax.block_until_ready((hT, cT))
    hT_ref, cT_ref = bnlstm_sequence_ref(x_seq, h0, c0, params)
    assert jnp.allclose(hT, hT_ref, atol=1e-3, rtol=1e-3), \
        float(jnp.abs(hT - hT_ref).max())
    assert jnp.allclose(cT, cT_ref, atol=1e-3, rtol=1e-3), \
        float(jnp.abs(cT - cT_ref).max())

    print("KERNEL_OK")
</pallas_src>

<mosaic_0001>
module attributes {stable_mosaic.version = 11 : i64} {
  func.func @kernel(%arg0: memref<8x16xf32, #tpu.memory_space<vmem>>, %arg1: memref<16x128xf32, #tpu.memory_space<vmem>>, %arg2: memref<32x128xf32, #tpu.memory_space<vmem>>, %arg3: memref<8x32xf32, #tpu.memory_space<vmem>>, %arg4: memref<8x32xf32, #tpu.memory_space<vmem>>, %arg5: memref<1x128xf32, #tpu.memory_space<vmem>>, %arg6: memref<1x128xf32, #tpu.memory_space<vmem>>, %arg7: memref<1x128xf32, #tpu.memory_space<vmem>>, %arg8: memref<1x32xf32, #tpu.memory_space<vmem>>, %arg9: memref<1x32xf32, #tpu.memory_space<vmem>>, %arg10: memref<8x32xf32, #tpu.memory_space<vmem>>, %arg11: memref<8x32xf32, #tpu.memory_space<vmem>>) attributes {dimension_semantics = [], scalar_prefetch = 0 : i64, scratch_operands = 0 : i64, tpu.core_type = #tpu.core_type<tc>} {
    %c0 = arith.constant 0 : index
    %c0_0 = arith.constant 0 : index
    %0 = vector.load %arg0[%c0, %c0_0] : memref<8x16xf32, #tpu.memory_space<vmem>>, vector<8x16xf32>
    %c0_1 = arith.constant 0 : index
    %c0_2 = arith.constant 0 : index
    %1 = vector.load %arg1[%c0_1, %c0_2] : memref<16x128xf32, #tpu.memory_space<vmem>>, vector<16x128xf32>
    %cst = arith.constant dense<0.000000e+00> : vector<8x128xf32>
    %2 = tpu.matmul %0, %1, %cst {dimension_numbers = #tpu.dot_dimension_numbers<[1], [0], [0], [1], [0, 0, 1, 1], [], []>} : vector<8x16xf32>, vector<16x128xf32>, vector<8x128xf32> -> vector<8x128xf32>
    %c0_3 = arith.constant 0 : index
    %c0_4 = arith.constant 0 : index
    %3 = vector.load %arg2[%c0_3, %c0_4] : memref<32x128xf32, #tpu.memory_space<vmem>>, vector<32x128xf32>
    %c0_5 = arith.constant 0 : index
    %c0_6 = arith.constant 0 : index
    %4 = vector.load %arg5[%c0_5, %c0_6] : memref<1x128xf32, #tpu.memory_space<vmem>>, vector<1x128xf32>
    %5 = vector.shape_cast %4 : vector<1x128xf32> to vector<1x128xf32>
    %6 = vector.broadcast %5 : vector<1x128xf32> to vector<8x128xf32>
    %c0_7 = arith.constant 0 : index
    %c0_8 = arith.constant 0 : index
    %7 = vector.load %arg6[%c0_7, %c0_8] : memref<1x128xf32, #tpu.memory_space<vmem>>, vector<1x128xf32>
    %8 = vector.shape_cast %7 : vector<1x128xf32> to vector<1x128xf32>
    %9 = vector.broadcast %8 : vector<1x128xf32> to vector<8x128xf32>
    %c0_9 = arith.constant 0 : index
    %c0_10 = arith.constant 0 : index
    %10 = vector.load %arg7[%c0_9, %c0_10] : memref<1x128xf32, #tpu.memory_space<vmem>>, vector<1x128xf32>
    %11 = vector.shape_cast %10 : vector<1x128xf32> to vector<1x128xf32>
    %12 = vector.broadcast %11 : vector<1x128xf32> to vector<8x128xf32>
    %c0_11 = arith.constant 0 : index
    %c0_12 = arith.constant 0 : index
    %13 = vector.load %arg8[%c0_11, %c0_12] : memref<1x32xf32, #tpu.memory_space<vmem>>, vector<1x32xf32>
    %14 = vector.shape_cast %13 : vector<1x32xf32> to vector<1x32xf32>
    %15 = vector.broadcast %14 : vector<1x32xf32> to vector<8x32xf32>
    %c0_13 = arith.constant 0 : index
    %c0_14 = arith.constant 0 : index
    %16 = vector.load %arg9[%c0_13, %c0_14] : memref<1x32xf32, #tpu.memory_space<vmem>>, vector<1x32xf32>
    %17 = vector.shape_cast %16 : vector<1x32xf32> to vector<1x32xf32>
    %18 = vector.broadcast %17 : vector<1x32xf32> to vector<8x32xf32>
    %c0_15 = arith.constant 0 : index
    %c0_16 = arith.constant 0 : index
    %19 = vector.load %arg3[%c0_15, %c0_16] : memref<8x32xf32, #tpu.memory_space<vmem>>, vector<8x32xf32>
    %c0_17 = arith.constant 0 : index
    %c0_18 = arith.constant 0 : index
    %20 = vector.load %arg4[%c0_17, %c0_18] : memref<8x32xf32, #tpu.memory_space<vmem>>, vector<8x32xf32>
    %cst_19 = arith.constant dense<0.000000e+00> : vector<8x128xf32>
    %21 = tpu.matmul %19, %3, %cst_19 {dimension_numbers = #tpu.dot_dimension_numbers<[1], [0], [0], [1], [0, 0, 1, 1], [], []>} : vector<8x32xf32>, vector<32x128xf32>, vector<8x128xf32> -> vector<8x128xf32>
    %cst_20 = arith.constant dense<0.000000e+00> : vector<128xf32>
    %22 = vector.multi_reduction <add>, %21, %cst_20 [0] : vector<8x128xf32> to vector<128xf32>
    %23 = vector.shape_cast %22 : vector<128xf32> to vector<1x128xf32>
    %cst_21 = arith.constant 8.000000e+00 : f32
    %24 = vector.broadcast %cst_21 : f32 to vector<1x128xf32>
    %25 = arith.divf %23, %24 : vector<1x128xf32>
    %26 = vector.broadcast %25 : vector<1x128xf32> to vector<8x128xf32>
    %27 = arith.subf %21, %26 : vector<8x128xf32>
    %28 = arith.mulf %27, %27 : vector<8x128xf32>
    %cst_22 = arith.constant dense<0.000000e+00> : vector<128xf32>
    %29 = vector.multi_reduction <add>, %28, %cst_22 [0] : vector<8x128xf32> to vector<128xf32>
    %30 = vector.shape_cast %29 : vector<128xf32> to vector<1x128xf32>
    %cst_23 = arith.constant 8.000000e+00 : f32
    %31 = vector.broadcast %cst_23 : f32 to vector<1x128xf32>
    %32 = arith.divf %30, %31 : vector<1x128xf32>
    %33 = arith.mulf %12, %27 : vector<8x128xf32>
    %cst_24 = arith.constant 1.000000e-03 : f32
    %34 = vector.broadcast %cst_24 : f32 to vector<1x128xf32>
    %35 = arith.addf %32, %34 : vector<1x128xf32>
    %36 = math.rsqrt %35 : vector<1x128xf32>
    %37 = vector.broadcast %36 : vector<1x128xf32> to vector<8x128xf32>
    %38 = arith.mulf %33, %37 : vector<8x128xf32>
    %cst_25 = arith.constant dense<0.000000e+00> : vector<128xf32>
    %39 = vector.multi_reduction <add>, %2, %cst_25 [0] : vector<8x128xf32> to vector<128xf32>
    %40 = vector.shape_cast %39 : vector<128xf32> to vector<1x128xf32>
    %cst_26 = arith.constant 8.000000e+00 : f32
    %41 = vector.broadcast %cst_26 : f32 to vector<1x128xf32>
    %42 = arith.divf %40, %41 : vector<1x128xf32>
    %43 = vector.broadcast %42 : vector<1x128xf32> to vector<8x128xf32>
    %44 = arith.subf %2, %43 : vector<8x128xf32>
    %45 = arith.mulf %44, %44 : vector<8x128xf32>
    %cst_27 = arith.constant dense<0.000000e+00> : vector<128xf32>
    %46 = vector.multi_reduction <add>, %45, %cst_27 [0] : vector<8x128xf32> to vector<128xf32>
    %47 = vector.shape_cast %46 : vector<128xf32> to vector<1x128xf32>
    %cst_28 = arith.constant 8.000000e+00 : f32
    %48 = vector.broadcast %cst_28 : f32 to vector<1x128xf32>
    %49 = arith.divf %47, %48 : vector<1x128xf32>
    %50 = arith.mulf %9, %44 : vector<8x128xf32>
    %cst_29 = arith.constant 1.000000e-03 : f32
    %51 = vector.broadcast %cst_29 : f32 to vector<1x128xf32>
    %52 = arith.addf %49, %51 : vector<1x128xf32>
    %53 = math.rsqrt %52 : vector<1x128xf32>
    %54 = vector.broadcast %53 : vector<1x128xf32> to vector<8x128xf32>
    %55 = arith.mulf %50, %54 : vector<8x128xf32>
    %56 = arith.addf %38, %55 : vector<8x128xf32>
    %57 = arith.addf %56, %6 : vector<8x128xf32>
    %58 = arith.negf %57 : vector<8x128xf32>
    %59 = math.exp %58 : vector<8x128xf32>
    %cst_30 = arith.constant 1.000000e+00 : f32
    %60 = vector.broadcast %cst_30 : f32 to vector<8x128xf32>
    %61 = arith.addf %60, %59 : vector<8x128xf32>
    %62 = arith.divf %60, %61 : vector<8x128xf32>
    %63 = vector.extract_strided_slice %62 {offsets = [0, 0], sizes = [8, 32], strides = [1, 1]} : vector<8x128xf32> to vector<8x32xf32>
    %64 = vector.extract_strided_slice %62 {offsets = [0, 32], sizes = [8, 32], strides = [1, 1]} : vector<8x128xf32> to vector<8x32xf32>
    %65 = vector.extract_strided_slice %62 {offsets = [0, 64], sizes = [8, 32], strides = [1, 1]} : vector<8x128xf32> to vector<8x32xf32>
    %66 = vector.extract_strided_slice %62 {offsets = [0, 96], sizes = [8, 32], strides = [1, 1]} : vector<8x128xf32> to vector<8x32xf32>
    %cst_31 = arith.constant 2.000000e+00 : f32
    %67 = vector.broadcast %cst_31 : f32 to vector<8x32xf32>
    %68 = arith.mulf %67, %66 : vector<8x32xf32>
    %cst_32 = arith.constant 1.000000e+00 : f32
    %69 = vector.broadcast %cst_32 : f32 to vector<8x32xf32>
    %70 = arith.subf %68, %69 : vector<8x32xf32>
    %71 = arith.mulf %63, %20 : vector<8x32xf32>
    %72 = arith.mulf %64, %70 : vector<8x32xf32>
    %73 = arith.addf %71, %72 : vector<8x32xf32>
    %cst_33 = arith.constant dense<0.000000e+00> : vector<32xf32>
    %74 = vector.multi_reduction <add>, %73, %cst_33 [0] : vector<8x32xf32> to vector<32xf32>
    %75 = vector.shape_cast %74 : vector<32xf32> to vector<1x32xf32>
    %cst_34 = arith.constant 8.000000e+00 : f32
    %76 = vector.broadcast %cst_34 : f32 to vector<1x32xf32>
    %77 = arith.divf %75, %76 : vector<1x32xf32>
    %78 = vector.broadcast %77 : vector<1x32xf32> to vector<8x32xf32>
    %79 = arith.subf %73, %78 : vector<8x32xf32>
    %80 = arith.mulf %79, %79 : vector<8x32xf32>
    %cst_35 = arith.constant dense<0.000000e+00> : vector<32xf32>
    %81 = vector.multi_reduction <add>, %80, %cst_35 [0] : vector<8x32xf32> to vector<32xf32>
    %82 = vector.shape_cast %81 : vector<32xf32> to vector<1x32xf32>
    %cst_36 = arith.constant 8.000000e+00 : f32
    %83 = vector.broadcast %cst_36 : f32 to vector<1x32xf32>
    %84 = arith.divf %82, %83 : vector<1x32xf32>
    %85 = arith.mulf %15, %79 : vector<8x32xf32>
    %cst_37 = arith.constant 1.000000e-03 : f32
    %86 = vector.broadcast %cst_37 : f32 to vector<1x32xf32>
    %87 = arith.addf %84, %86 : vector<1x32xf32>
    %88 = math.rsqrt %87 : vector<1x32xf32>
    %89 = vector.broadcast %88 : vector<1x32xf32> to vector<8x32xf32>
    %90 = arith.mulf %85, %89 : vector<8x32xf32>
    %91 = arith.addf %90, %18 : vector<8x32xf32>
    %92 = math.tanh %91 : vector<8x32xf32>
    %93 = arith.mulf %65, %92 : vector<8x32xf32>
    %c0_38 = arith.constant 0 : index
    %c0_39 = arith.constant 0 : index
    %94 = vector.load %arg10[%c0_38, %c0_39] : memref<8x32xf32, #tpu.memory_space<vmem>>, vector<8x32xf32>
    tpu.vector_store %arg10[%c0_38, %c0_39], %93 {strides = array<i32>} : memref<8x32xf32, #tpu.memory_space<vmem>>, vector<8x32xf32>,
    %c0_40 = arith.constant 0 : index
    %c0_41 = arith.constant 0 : index
    %95 = vector.load %arg11[%c0_40, %c0_41] : memref<8x32xf32, #tpu.memory_space<vmem>>, vector<8x32xf32>
    tpu.vector_store %arg11[%c0_40, %c0_41], %73 {strides = array<i32>} : memref<8x32xf32, #tpu.memory_space<vmem>>, vector<8x32xf32>,
    return
  }
}

</mosaic_0001>

<bundles_post_ra>
// kernel: bnlstm_sequence.1
= control target key start
LH: loop header
LB: loop body
LE: loop exit
PB: predicated region body
PF: predicated region fallthrough
CT: control target
= control target key end

     0   :  { %17 = vsyncpa [#allocation3], 0  ;;  %s664_s0 = inlined_call_operand.vmem [shape: f32[8,16], index: 0, kind: input, shape index: {}]   ;;  %s665_s1 = inlined_call_operand.hbm [shape: f32[16,128], index: 1, kind: input, shape index: {}]   ;;  %s666_s2 = inlined_call_operand.hbm [shape: f32[32,128], index: 2, kind: input, shape index: {}]   ;;  %s667_s3 = inlined_call_operand.hbm [shape: f32[8,32], index: 3, kind: input, shape index: {}]   ;;  %s668_s4 = inlined_call_operand.hbm [shape: f32[8,32], index: 4, kind: input, shape index: {}]   ;;  %s669_s5 = inlined_call_operand.vmem [shape: f32[1,128], index: 5, kind: input, shape index: {}]   ;;  %s670_s6 = inlined_call_operand.vmem [shape: f32[1,128], index: 6, kind: input, shape index: {}]   ;;  %s671_s7 = inlined_call_operand.vmem [shape: f32[1,128], index: 7, kind: input, shape index: {}]   ;;  %s672_s8 = inlined_call_operand.vmem [shape: f32[1,32], index: 8, kind: input, shape index: {}]   ;;  %s673_s9 = inlined_call_operand.vmem [shape: f32[1,32], index: 9, kind: input, shape index: {}]   ;;  %s674_s10 = inlined_call_operand.hbm [shape: f32[8,32], index: 10, kind: output, shape index: {0}]   ;;  %s675_s11 = inlined_call_operand.hbm [shape: f32[8,32], index: 11, kind: output, shape index: {1}]  }
   0x1   :  { %18 = vsyncpa [#allocation6], 0 }
   0x2   :  { %19 = vsyncpa [#allocation9], 0 }
   0x3   :  { %20 = vsyncpa [#allocation4], 0 }
   0x4   :  { %21 = vsyncpa [#allocation12], 0  ;;  %s41_s19 = sshll.u32 %s666_s2, 4  ;;  %s541_s20 = smov [#allocation5]   ;;  %s42_s19 = int_to_ptr.hbm [resolvable:$true] %s41_s19 }
   0x5   :  { %s43_s21 = sshll.u32 %s541_s20, 4  ;;  %s28_s24 = sshll.u32 %s665_s1, 4  ;;  %s44_s21 = int_to_ptr.vmem [resolvable:$true] %s43_s21  ;;  %s29_s24 = int_to_ptr.hbm [resolvable:$true] %s28_s24 }
   0x6   :  { %s542_s25 = smov 128   ;;  %s543_s26 = smov 8  }
   0x7   :  { %49 = dma.hbm_to_vmem [thread:$0]  %s42_s19, 512, %s44_s21, [#allocation6], %s542_s25, %s542_s25, %s543_s26  }
   0x8   :  { %s544_s27 = smov [#allocation2]   ;;  %s55_s12 = sshll.u32 %s667_s3, 4  ;;  %s56_s12 = int_to_ptr.hbm [resolvable:$true] %s55_s12 }
   0x9   :  { %s30_s28 = sshll.u32 %s544_s27, 4  ;;  %s66_s14 = sshll.u32 %s668_s4, 4  ;;  %s31_s28 = int_to_ptr.vmem [resolvable:$true] %s30_s28  ;;  %s67_s14 = int_to_ptr.hbm [resolvable:$true] %s66_s14 }
   0xa   :  { %36 = dma.hbm_to_vmem [thread:$0]  %s29_s24, 256, %s31_s28, [#allocation3], %s542_s25, %s542_s25, %s543_s26  }
   0xb   :  { %s545_s15 = smov [#allocation7]   ;;  %s546_s1 = smov [#allocation8]  }
   0xc   :  { %s57_s16 = sshll.u32 %s545_s15, 4  ;;  %s68_s17 = sshll.u32 %s546_s1, 4  ;;  %s58_s16 = int_to_ptr.vmem [resolvable:$true] %s57_s16  ;;  %s69_s17 = int_to_ptr.vmem [resolvable:$true] %s68_s17 }
   0xd   :  { %60 = dma.hbm_to_vmem [thread:$0]  %s56_s12, 128, %s58_s16, [#allocation6]  }
   0xe   :  { %71 = dma.hbm_to_vmem [thread:$0]  %s67_s14, 128, %s69_s17, [#allocation9]  }
   0xf   :  { %531 = dma.done.wait [#allocation3], 256  }
  0x10   :  { %532 = vsyncadd [#allocation3], 4294967040 }
  0x11   :  { %533 = dma.done.wait [#allocation6], 640  }
  0x12   :  { %534 = vsyncadd [#allocation6], 4294966656 }
  0x13   :  { %535 = dma.done.wait [#allocation9], 128  }
  0x14   :  { %536 = vsyncadd [#allocation9], 4294967168  ;;  %v100_v0 = vld [vmem:[#allocation2 + $0x8] sm:$0xff]  ;;  %v99_v2 = vld [vmem:[#allocation2] sm:$0xff]  ;;  %vm101_vm0 = vcmask 130048   ;;  %vm151_vm1 = vcmask 261120  }
  0x15   :  { %v128_v1 = vld [vmem:[#allocation5 + $0x18] sm:$0xff]  ;;  %119 = vmatpush.msra.mxu0 %v100_v0  ;;  %v127_v3 = vld [vmem:[#allocation5 + $0x10] sm:$0xff]  ;;  %v126_v5 = vld [vmem:[#allocation5 + $0x8] sm:$0xff]  ;;  %v547_v8 = vmov 8.0   ;;  %s550_s26 = smov [#allocation11]   ;;  %s336_s29 = sshll.u32 %s675_s11, 4  ;;  %s337_s29 = int_to_ptr.hbm [resolvable:$true] %s336_s29 }
  0x16   :  { %167 = vmatpush.msra.mxu1 %v128_v1  ;;  %v98_v4 = vld [vmem:[%s664_s0] sm:$0xff]  ;;  %v125_v6 = vld [vmem:[#allocation5] sm:$0xff]  ;;  %373 = vrcp.f32 %v547_v8  ;;  %s334_s27 = sshll.u32 %s550_s26, 4  ;;  %s325_s13 = sshll.u32 %s674_s10, 4  ;;  %s335_s27 = int_to_ptr.vmem [resolvable:$true] %s334_s27  ;;  %s326_s13 = int_to_ptr.hbm [resolvable:$true] %s325_s13 }
  0x17   :  { %120 = vmatpush.msra.mxu0 %v99_v2  ;;  %v149_v7 = vld [vmem:[#allocation7] sm:$0xff]  ;;  %v368_v61 = vld [vmem:[%s670_s6] ss:$0 sm:$0xff]  ;;  %s549_s6 = smov 96  }
  0x18   :  { %168 = vmatpush.msra.mxu1 %v127_v3  ;;  %353 = vmatmul.msk.f32.vlgmr.msra.gmra.mxu0 %vm101_vm0, %v98_v4  ;;  %v370_v62 = vld [vmem:[%s671_s7] ss:$0 sm:$0xff] }
  0x1a   :  { %169 = vmatpush.msra.mxu1 %v126_v5 }
  0x1c   :  { %170 = vmatpush.msra.mxu1 %v125_v6  ;;  %v374_v9 = vpop.eup %373  ;;  %v369_v6 = vld [vmem:[%s669_s5] ss:$0 sm:$0xff]  ;;  %s548_s5 = smov 64  }
  0x1d   :  { %354 = vmatmul.msk.f32.vlgmr.msra.gmra.mxu1 %vm151_vm1, %v149_v7  ;;  %v182_v10 = vmul.f32 8.0, %v374_v9  ;;  %vm186_vm2 = vweird.f32 %v374_v9 }
  0x1f   :  { %v183_v11 = vsub.f32 1.0, %v182_v10 }
  0x21   :  { %v184_v14 = vmul.f32 %v374_v9, %v183_v11 }
  0x23   :  { %v185_v19 = vadd.f32 %v374_v9, %v184_v14 }
  0x25   :  { %v628_v24 = vsel %vm186_vm2, %v374_v9, %v185_v19 }
  0x95   :  { %v122_v12 = vpop.f32.mrf.mxu0 }
  0x96   :  { %v211_v13 = vrot.slane %v122_v12, 4 }
  0x98   :  { %v212_v15 = vadd.f32 %v211_v13, %v122_v12 }
  0x9a   :  { %v172_v16 = vpop.f32.mrf.mxu1  ;;  %v213_v17 = vrot.slane %v212_v15, 2 }
  0x9b   :  { %v175_v18 = vrot.slane %v172_v16, 4 }
  0x9c   :  { %v214_v20 = vadd.f32 %v213_v17, %v212_v15 }
  0x9d   :  { %v176_v21 = vadd.f32 %v175_v18, %v172_v16 }
  0x9e   :  { %v215_v22 = vrot.slane %v214_v20, 1 }
  0x9f   :  { %v177_v23 = vrot.slane %v176_v21, 2 }
  0xa0   :  { %v216_v25 = vadd.f32 %v215_v22, %v214_v20 }
  0xa1   :  { %v178_v26 = vadd.f32 %v177_v23, %v176_v21 }
  0xa2   :  { %v217_v27 = vmul.f32 %v216_v25, %v628_v24 }
  0xa3   :  { %v179_v28 = vrot.slane %v178_v26, 1 }
  0xa4   :  { %v218_v29 = vsub.f32 %v122_v12, %v217_v27 }
  0xa5   :  { %v180_v30 = vadd.f32 %v179_v28, %v178_v26  ;;  %v150_v28 = vld [vmem:[#allocation8] sm:$0xff] }
  0xa6   :  { %v219_v31 = vmul.f32 %v218_v29, %v218_v29  ;;  %v227_v2 = vmul.f32 %v368_v61, %v218_v29 }
  0xa7   :  { %v188_v32 = vmul.f32 %v628_v24, %v180_v30 }
  0xa8   :  { %v220_v33 = vrot.slane %v219_v31, 4 }
  0xa9   :  { %v189_v34 = vsub.f32 %v172_v16, %v188_v32 }
  0xaa   :  { %v221_v35 = vadd.f32 %v220_v33, %v219_v31 }
  0xab   :  { %v190_v36 = vmul.f32 %v189_v34, %v189_v34  ;;  %v198_v3 = vmul.f32 %v370_v62, %v189_v34 }
  0xac   :  { %v222_v37 = vrot.slane %v221_v35, 2 }
  0xad   :  { %v191_v38 = vrot.slane %v190_v36, 4 }
  0xae   :  { %v223_v39 = vadd.f32 %v222_v37, %v221_v35 }
  0xaf   :  { %v192_v40 = vadd.f32 %v191_v38, %v190_v36 }
  0xb0   :  { %v224_v41 = vrot.slane %v223_v39, 1 }
  0xb1   :  { %v193_v42 = vrot.slane %v192_v40, 2 }
  0xb2   :  { %v225_v43 = vadd.f32 %v224_v41, %v223_v39 }
  0xb3   :  { %v194_v44 = vadd.f32 %v193_v42, %v192_v40 }
  0xb4   :  { %v226_v45 = vmul.f32 %v225_v43, %v628_v24 }
  0xb5   :  { %v195_v46 = vrot.slane %v194_v44, 1 }
  0xb6   :  { %v228_v47 = vadd.f32 0.001, %v226_v45 }
  0xb7   :  { %v196_v48 = vadd.f32 %v195_v46, %v194_v44 }
  0xb8   :  { %375 = vrsqrt.f32 %v228_v47  ;;  %vm235_vm4 = vweird.f32 %v228_v47 }
  0xb9   :  { %v197_v49 = vmul.f32 %v196_v48, %v628_v24 }
  0xbb   :  { %v199_v50 = vadd.f32 0.001, %v197_v49 }
  0xbd   :  { %377 = vrsqrt.f32 %v199_v50  ;;  %vm206_vm7 = vweird.f32 %v199_v50 }
  0xbe   :  { %v376_v51 = vpop.eup %375 }
  0xbf   :  { %v230_v52 = vmul.f32 %v376_v51, %v228_v47  ;;  %vm236_vm3 = vweird.f32 %v376_v51 }
  0xc0   :  { %vm237_vm6 = vmor %vm235_vm4, %vm236_vm3 }
  0xc1   :  { %v231_v53 = vmul.f32 %v376_v51, %v230_v52 }
  0xc3   :  { %v378_v54 = vpop.eup %377  ;;  %v232_v55 = vmul.f32 0.5, %v231_v53 }
  0xc4   :  { %v201_v56 = vmul.f32 %v378_v54, %v199_v50  ;;  %vm207_vm5 = vweird.f32 %v378_v54 }
  0xc5   :  { %v233_v57 = vsub.f32 1.5, %v232_v55  ;;  %vm208_vm8 = vmor %vm206_vm7, %vm207_vm5  ;;  %v371_v55 = vld [vmem:[%s672_s8] ss:$0 sm:$0xff] }
  0xc6   :  { %v202_v58 = vmul.f32 %v378_v54, %v201_v56 }
  0xc7   :  { %v234_v59 = vmul.f32 %v376_v51, %v233_v57 }
  0xc8   :  { %v203_v60 = vmul.f32 0.5, %v202_v58 }
  0xc9   :  { %v238_v0 = vsel %vm237_vm6, %v376_v51, %v234_v59  ;;  %v372_v59 = vld [vmem:[%s673_s9] ss:$0 sm:$0xff]  ;;  %s551_s9 = smov [#allocation10]  }
  0xca   :  { %v204_v63 = vsub.f32 1.5, %v203_v60  ;;  %v239_v5 = vmul.f32 %v238_v0, %v227_v2  ;;  %s323_s30 = sshll.u32 %s551_s9, 4  ;;  %s324_s30 = int_to_ptr.vmem [resolvable:$true] %s323_s30 }
  0xcc   :  { %v205_v1 = vmul.f32 %v378_v54, %v204_v63 }
  0xce   :  { %v209_v4 = vsel %vm208_vm8, %v378_v54, %v205_v1 }
  0xcf   :  { %v210_v7 = vmul.f32 %v209_v4, %v198_v3 }
  0xd1   :  { %v240_v8 = vadd.f32 %v239_v5, %v210_v7 }
  0xd3   :  { %v241_v9 = vadd.f32 %v369_v6, %v240_v8 }
  0xd5   :  { %v355_v10 = vmul.f32 -1.442695, %v241_v9 }
  0xd7   :  { %379 = vpow2.f32 %v355_v10 }
  0xdd   :  { %v380_v11 = vpop.eup %379 }
  0xde   :  { %v245_v12 = vadd.f32 1.0, %v380_v11 }
  0xe0   :  { %381 = vrcp.f32 %v245_v12  ;;  %v257_v16 = vand.u32 2147483648, %v245_v12  ;;  %v255_v18 = vand.u32 2147483647, %v245_v12  ;;  %vm251_vm10 = vweird.f32 %v245_v12 }
  0xe2   :  { %v258_v20 = vor.u32 1.1754944e-38, %v257_v16  ;;  %vm256_vm12 = vcmp.eq.f32.partialorder %v255_v18, 8.507059e+37 }
  0xe6   :  { %v382_v13 = vpop.eup %381 }
  0xe7   :  { %v247_v14 = vmul.f32 %v382_v13, %v245_v12  ;;  %vm252_vm9 = vweird.f32 %v382_v13 }
  0xe8   :  { %vm253_vm11 = vmor %vm251_vm10, %vm252_vm9 }
  0xe9   :  { %v248_v15 = vsub.f32 1.0, %v247_v14 }
  0xeb   :  { %v249_v17 = vmul.f32 %v382_v13, %v248_v15 }
  0xed   :  { %v250_v19 = vadd.f32 %v382_v13, %v249_v17 }
  0xef   :  { %v254_v21 = vsel %vm253_vm11, %v382_v13, %v250_v19 }
  0xf0   :  { %v259_v22 = vsel %vm256_vm12, %v258_v20, %v254_v21 }
  0xf1   :  { %v261_v23 = vmul.f32 2.0, %v259_v22  ;;  %v263_v29 = vmul.f32 %v259_v22, %v150_v28 }
  0xf3   :  { %v356_v25 = vadd.f32 -1.0, %v261_v23 }
  0xf5   :  { %265 = vrot.lane.b32.xlu0 %v356_v25, %s548_s5 }
 0x167   :  { %v266_v26 = vpop.permute.xlu0 %265 }
 0x168   :  { %v268_v27 = vmul.f32 %v266_v26, %v259_v22 }
 0x16a   :  { %270 = vrot.lane.b32.xlu0 %v268_v27, %s549_s6 }
 0x1dc   :  { %v271_v30 = vpop.permute.xlu0 %270 }
 0x1dd   :  { %v273_v31 = vadd.f32 %v271_v30, %v263_v29 }
 0x1df   :  { %v274_v32 = vsel %vm151_vm1, %v273_v31, 0.0  ;;  %317 = vst.msk [vmem:[#allocation11] sm:$0xff] %vm151_vm1, %v273_v31 }
 0x1e0   :  { %v275_v33 = vrot.slane %v274_v32, 4  ;;  %339 = dma.vmem_to_hbm [thread:$0]  %s335_s27, 128, %s337_s29, [#allocation12]  }
 0x1e2   :  { %v276_v34 = vadd.f32 %v275_v33, %v274_v32 }
 0x1e4   :  { %v277_v35 = vrot.slane %v276_v34, 2 }
 0x1e6   :  { %v278_v36 = vadd.f32 %v277_v35, %v276_v34 }
 0x1e8   :  { %v279_v37 = vrot.slane %v278_v36, 1 }
 0x1ea   :  { %v280_v38 = vadd.f32 %v279_v37, %v278_v36 }
 0x1ec   :  { %v281_v39 = vmul.f32 %v280_v38, %v628_v24 }
 0x1ee   :  { %v282_v40 = vsub.f32 %v273_v31, %v281_v39 }
 0x1f0   :  { %v283_v41 = vmul.f32 %v282_v40, %v282_v40  ;;  %v292_v58 = vmul.f32 %v371_v55, %v282_v40 }
 0x1f2   :  { %v284_v42 = vsel %vm151_vm1, %v283_v41, 0.0 }
 0x1f3   :  { %v285_v43 = vrot.slane %v284_v42, 4 }
 0x1f5   :  { %v286_v44 = vadd.f32 %v285_v43, %v284_v42 }
 0x1f7   :  { %v287_v45 = vrot.slane %v286_v44, 2 }
 0x1f9   :  { %v288_v46 = vadd.f32 %v287_v45, %v286_v44 }
 0x1fb   :  { %v289_v47 = vrot.slane %v288_v46, 1 }
 0x1fd   :  { %v290_v48 = vadd.f32 %v289_v47, %v288_v46 }
 0x1ff   :  { %v291_v49 = vmul.f32 %v290_v48, %v628_v24 }
 0x201   :  { %v293_v50 = vadd.f32 0.001, %v291_v49 }
 0x203   :  { %383 = vrsqrt.f32 %v293_v50  ;;  %vm300_vm14 = vweird.f32 %v293_v50 }
 0x209   :  { %v384_v51 = vpop.eup %383 }
 0x20a   :  { %v295_v52 = vmul.f32 %v384_v51, %v293_v50  ;;  %vm301_vm13 = vweird.f32 %v384_v51 }
 0x20b   :  { %vm302_vm15 = vmor %vm300_vm14, %vm301_vm13 }
 0x20c   :  { %v296_v53 = vmul.f32 %v384_v51, %v295_v52 }
 0x20e   :  { %v297_v54 = vmul.f32 0.5, %v296_v53 }
 0x210   :  { %v298_v56 = vsub.f32 1.5, %v297_v54 }
 0x212   :  { %v299_v57 = vmul.f32 %v384_v51, %v298_v56 }
 0x214   :  { %v303_v24 = vsel %vm302_vm15, %v384_v51, %v299_v57 }
 0x215   :  { %v304_v60 = vmul.f32 %v303_v24, %v292_v58 }
 0x217   :  { %v305_v61 = vadd.f32 %v372_v59, %v304_v60 }
 0x219   :  { %385 = vtanh.f32 %v305_v61 }
 0x21f   :  { %v386_v62 = vpop.eup %385 }
 0x220   :  { %308 = vrot.lane.b32.xlu1 %v386_v62, %s548_s5 }
 0x292   :  { %v309_v63 = vpop.permute.xlu1 %308 }
 0x293   :  { %v311_v0 = vmul.f32 %v309_v63, %v259_v22 }
 0x295   :  { %313 = vrot.lane.b32.xlu1 %v311_v0, %s548_s5 }
 0x307   :  { %v314_v1 = vpop.permute.xlu1 %313 }
 0x308   :  { %316 = vst.msk [vmem:[#allocation10] sm:$0xff] %vm151_vm1, %v314_v1 }
 0x309   :  { %328 = dma.vmem_to_hbm [thread:$0]  %s324_s30, 128, %s326_s13, [#allocation4]  }
 0x30a   :  { %537 = dma.done.wait [#allocation4], 128  }
 0x30b   :  { %538 = vsyncadd [#allocation4], 4294967168 }
 0x30c   :  { %539 = dma.done.wait [#allocation12], 128  }
 0x30d   :  { %540 = vsyncadd [#allocation12], 4294967168 }
 0x30e   :  { %348 = vsyncpa [#allocation3], 1 }
 0x30f   :  { %349 = vsyncpa [#allocation6], 1 }
 0x310   :  { %350 = vsyncpa [#allocation9], 1 }
 0x311   :  { %351 = vsyncpa [#allocation4], 1 }
 0x312   :  { %352 = vsyncpa [#allocation12], 1 }

</bundles_post_ra>
